<compile_context>
chip_gen: v5e
topology: v5e:2x2
jax: 0.10.0
libtpu: 0.0.40
codegen_flags: <defaults>
</compile_context>

<pallas_src>
import functools

import jax
import jax.numpy as jnp
from jax import lax
from jax.experimental import pallas as pl
from jax.experimental.pallas import tpu as pltpu


def _round_up(x, m):
    return ((x + m - 1) // m) * m


def rbm_gibbs_kernel(u_h_ref, u_v_ref, v_ref, w_ref, wt_ref, vb_ref, hb_ref,
                     out_ref, *, k):
    """One batch tile: run the full k-step Gibbs chain and write v_ (negative phase)."""
    w = w_ref[...]      # (Hp, Vp) bf16   : used for h -> v  (h @ W)
    wt = wt_ref[...]    # (Vp, Hp) bf16   : used for v -> h  (v @ W.T), transpose hoisted
    vb = vb_ref[...]    # (1, Vp) f32
    hb = hb_ref[...]    # (1, Hp) f32

    def sample_h(v_bf16, step):
        # F.linear(v, W, h_bias) = v @ W.T + h_bias ; f32 accumulation on MXU.
        logits = jnp.dot(v_bf16, wt, preferred_element_type=jnp.float32) + hb
        p_h = jax.nn.sigmoid(logits)
        return jnp.where(u_h_ref[step] < p_h, 1.0, 0.0).astype(jnp.bfloat16)

    def sample_v(h_bf16, step):
        # F.linear(h, W.t(), v_bias) = h @ W + v_bias
        logits = jnp.dot(h_bf16, w, preferred_element_type=jnp.float32) + vb
        p_v = jax.nn.sigmoid(logits)
        return jnp.where(u_v_ref[step] < p_v, 1.0, 0.0).astype(jnp.bfloat16)

    v0 = v_ref[...].astype(jnp.bfloat16)   # samples are exactly {0,1} -> bf16 is exact
    h0 = sample_h(v0, 0)                   # h1

    def body(step, carry):
        _, h = carry
        v_ = sample_v(h, step)
        h_ = sample_h(v_, step + 1)
        return v_, h_

    v_, _ = lax.fori_loop(0, k, body, (v0, h0))
    out_ref[...] = v_.astype(jnp.float32)


def rbm_forward(v, W, v_bias, h_bias, *, k, key, block_b=256):
    """Pallas equivalent of RBM.forward(v) -> (v, v_)."""
    # The PyTorch reference only defines v_ inside the k-loop, so k >= 1.
    assert k >= 1, "RBM.forward requires k >= 1 (v_ is produced inside the Gibbs loop)"

    B, V = v.shape
    H = W.shape[0]

    # Lane-dense padding: features -> multiples of 128, batch tile -> multiple of 16.
    Vp = _round_up(V, 128)
    Hp = _round_up(H, 128)
    TB = min(block_b, _round_up(B, 16))
    Bp = _round_up(B, TB)
    nb = Bp // TB

    # Zero padding keeps padded units decoupled from real ones
    # (zero weight rows/cols, zero biases).
    v_p = jnp.zeros((Bp, Vp), jnp.float32).at[:B, :V].set(v.astype(jnp.float32))
    W_p = jnp.zeros((Hp, Vp), jnp.float32).at[:H, :V].set(W.astype(jnp.float32))
    vb_p = jnp.zeros((1, Vp), jnp.float32).at[0, :V].set(v_bias.astype(jnp.float32))
    hb_p = jnp.zeros((1, Hp), jnp.float32).at[0, :H].set(h_bias.astype(jnp.float32))

    # bf16 weights (both layouts) resident in VMEM; f32 accumulation in-kernel.
    w_bf = W_p.astype(jnp.bfloat16)          # (Hp, Vp)
    wt_bf = W_p.T.astype(jnp.bfloat16)       # (Vp, Hp)

    # Host-side uniform draws for every Bernoulli sample in the chain:
    #   k+1 hidden sampling steps, k visible sampling steps.
    kh, kv = jax.random.split(key)
    u_h = jax.random.uniform(kh, (k + 1, Bp, Hp), dtype=jnp.float32)
    u_v = jax.random.uniform(kv, (k, Bp, Vp), dtype=jnp.float32)

    v_neg_p = pl.pallas_call(
        functools.partial(rbm_gibbs_kernel, k=k),
        out_shape=jax.ShapeDtypeStruct((Bp, Vp), jnp.float32),
        grid=(nb,),
        in_specs=[
            pl.BlockSpec((k + 1, TB, Hp), lambda i: (0, i, 0)),   # u_h (per-tile randoms)
            pl.BlockSpec((k, TB, Vp), lambda i: (0, i, 0)),       # u_v (per-tile randoms)
            pl.BlockSpec((TB, Vp), lambda i: (i, 0)),             # v tile
            pl.BlockSpec((Hp, Vp), lambda i: (0, 0)),             # W   (bf16, resident)
            pl.BlockSpec((Vp, Hp), lambda i: (0, 0)),             # W.T (bf16, resident)
            pl.BlockSpec((1, Vp), lambda i: (0, 0)),              # v_bias row
            pl.BlockSpec((1, Hp), lambda i: (0, 0)),              # h_bias row
        ],
        out_specs=pl.BlockSpec((TB, Vp), lambda i: (i, 0)),
        compiler_params=pltpu.CompilerParams(
            dimension_semantics=("parallel",)),                   # v7x: shard tiles on 2 TCs
    )(u_h, u_v, v_p, w_bf, wt_bf, vb_p, hb_p)

    return v, v_neg_p[:B, :V]


if __name__ == "__main__":
    # Small deterministic setup consistent with RBM(n_vis, n_hin, k).
    n_vis, n_hin, k = 16, 32, 3
    batch = 8

    key = jax.random.PRNGKey(0)
    k_w, k_v, k_s = jax.random.split(key, 3)

    # Parameter init mirrors the module: W ~ 0.01 * randn(n_hin, n_vis), zero biases.
    W = (0.01 * jax.random.normal(k_w, (n_hin, n_vis))).astype(jnp.float32)
    v_bias = jnp.zeros((n_vis,), dtype=jnp.float32)
    h_bias = jnp.zeros((n_hin,), dtype=jnp.float32)

    # Binary visible input, as an RBM would see.
    v = (jax.random.uniform(k_v, (batch, n_vis)) < 0.5).astype(jnp.float32)

    v_out, v_neg = rbm_forward(v, W, v_bias, h_bias, k=k, key=k_s)
    jax.block_until_ready(v_neg)

    assert v_out.shape == (batch, n_vis)
    assert v_neg.shape == (batch, n_vis)
    # Sampled visibles are binary.
    assert bool(jnp.all((v_neg == 0.0) | (v_neg == 1.0)))

    print("KERNEL_OK")
</pallas_src>

<mosaic_0001>
module attributes {stable_mosaic.version = 11 : i64} {
  func.func @rbm_gibbs_kernel(%arg0: i32, %arg1: memref<4x16x128xf32, #tpu.memory_space<vmem>>, %arg2: memref<3x16x128xf32, #tpu.memory_space<vmem>>, %arg3: memref<16x128xf32, #tpu.memory_space<vmem>>, %arg4: memref<128x128xbf16, #tpu.memory_space<vmem>>, %arg5: memref<128x128xbf16, #tpu.memory_space<vmem>>, %arg6: memref<1x128xf32, #tpu.memory_space<vmem>>, %arg7: memref<1x128xf32, #tpu.memory_space<vmem>>, %arg8: memref<16x128xf32, #tpu.memory_space<vmem>>) attributes {dimension_semantics = [#tpu.dimension_semantics<parallel>], iteration_bounds = array<i64: 1>, scalar_prefetch = 0 : i64, scratch_operands = 0 : i64, tpu.core_type = #tpu.core_type<tc>, window_params = [{transform_indices = @transform_0, window_bounds = array<i64: 4, 16, 128>}, {transform_indices = @transform_1, window_bounds = array<i64: 3, 16, 128>}, {transform_indices = @transform_2, window_bounds = array<i64: 16, 128>}, {pipeline_mode = #tpu.pipeline_mode<synchronous>, transform_indices = @transform_3, window_bounds = array<i64: 128, 128>}, {pipeline_mode = #tpu.pipeline_mode<synchronous>, transform_indices = @transform_4, window_bounds = array<i64: 128, 128>}, {pipeline_mode = #tpu.pipeline_mode<synchronous>, transform_indices = @transform_5, window_bounds = array<i64: 1, 128>}, {pipeline_mode = #tpu.pipeline_mode<synchronous>, transform_indices = @transform_6, window_bounds = array<i64: 1, 128>}, {transform_indices = @transform_7, window_bounds = array<i64: 16, 128>}]} {
    %c0 = arith.constant 0 : index
    %c0_0 = arith.constant 0 : index
    %0 = vector.load %arg4[%c0, %c0_0] : memref<128x128xbf16, #tpu.memory_space<vmem>>, vector<128x128xbf16>
    %c0_1 = arith.constant 0 : index
    %c0_2 = arith.constant 0 : index
    %1 = vector.load %arg5[%c0_1, %c0_2] : memref<128x128xbf16, #tpu.memory_space<vmem>>, vector<128x128xbf16>
    %c0_3 = arith.constant 0 : index
    %c0_4 = arith.constant 0 : index
    %2 = vector.load %arg6[%c0_3, %c0_4] : memref<1x128xf32, #tpu.memory_space<vmem>>, vector<1x128xf32>
    %c0_5 = arith.constant 0 : index
    %c0_6 = arith.constant 0 : index
    %3 = vector.load %arg7[%c0_5, %c0_6] : memref<1x128xf32, #tpu.memory_space<vmem>>, vector<1x128xf32>
    %c0_7 = arith.constant 0 : index
    %c0_8 = arith.constant 0 : index
    %4 = vector.load %arg3[%c0_7, %c0_8] : memref<16x128xf32, #tpu.memory_space<vmem>>, vector<16x128xf32>
    %5 = arith.truncf %4 : vector<16x128xf32> to vector<16x128xbf16>
    %cst = arith.constant dense<0.000000e+00> : vector<16x128xf32>
    %6 = tpu.matmul %5, %1, %cst {dimension_numbers = #tpu.dot_dimension_numbers<[1], [0], [0], [1], [0, 0, 1, 1], [], []>} : vector<16x128xbf16>, vector<128x128xbf16>, vector<16x128xf32> -> vector<16x128xf32>
    %7 = vector.broadcast %3 : vector<1x128xf32> to vector<16x128xf32>
    %8 = arith.addf %6, %7 : vector<16x128xf32>
    %9 = arith.negf %8 : vector<16x128xf32>
    %10 = math.exp %9 : vector<16x128xf32>
    %cst_9 = arith.constant 1.000000e+00 : f32
    %11 = vector.broadcast %cst_9 : f32 to vector<16x128xf32>
    %12 = arith.addf %11, %10 : vector<16x128xf32>
    %13 = arith.divf %11, %12 : vector<16x128xf32>
    %c0_10 = arith.constant 0 : index
    %c0_11 = arith.constant 0 : index
    %c0_12 = arith.constant 0 : index
    %14 = vector.load %arg1[%c0_10, %c0_11, %c0_12] : memref<4x16x128xf32, #tpu.memory_space<vmem>>, vector<1x16x128xf32>
    %15 = vector.shape_cast %14 : vector<1x16x128xf32> to vector<16x128xf32>
    %16 = arith.cmpf olt, %15, %13 : vector<16x128xf32>
    %cst_13 = arith.constant 1.000000e+00 : f32
    %cst_14 = arith.constant 0.000000e+00 : f32
    %17 = vector.broadcast %cst_13 : f32 to vector<16x128xf32>
    %18 = vector.broadcast %cst_14 : f32 to vector<16x128xf32>
    %19 = arith.select %16, %17, %18 : vector<16x128xi1>, vector<16x128xf32>
    %20 = arith.truncf %19 : vector<16x128xf32> to vector<16x128xbf16>
    %c0_i32 = arith.constant 0 : i32
    %c3_i32 = arith.constant 3 : i32
    %21 = arith.addi %c0_i32, %c3_i32 : i32
    %c1_i32 = arith.constant 1 : i32
    %22:2 = scf.for %arg9 = %c0_i32 to %21 step %c1_i32 iter_args(%arg10 = %5, %arg11 = %20) -> (vector<16x128xbf16>, vector<16x128xbf16>)  : i32 {
      %cst_18 = arith.constant dense<0.000000e+00> : vector<16x128xf32>
      %25 = tpu.matmul %arg11, %0, %cst_18 {dimension_numbers = #tpu.dot_dimension_numbers<[1], [0], [0], [1], [0, 0, 1, 1], [], []>} : vector<16x128xbf16>, vector<128x128xbf16>, vector<16x128xf32> -> vector<16x128xf32>
      %26 = vector.broadcast %2 : vector<1x128xf32> to vector<16x128xf32>
      %27 = arith.addf %25, %26 : vector<16x128xf32>
      %28 = arith.negf %27 : vector<16x128xf32>
      %29 = math.exp %28 : vector<16x128xf32>
      %cst_19 = arith.constant 1.000000e+00 : f32
      %30 = vector.broadcast %cst_19 : f32 to vector<16x128xf32>
      %31 = arith.addf %30, %29 : vector<16x128xf32>
      %32 = arith.divf %30, %31 : vector<16x128xf32>
      %33 = arith.index_cast %arg9 : i32 to index
      %c0_20 = arith.constant 0 : index
      %c0_21 = arith.constant 0 : index
      %34 = vector.load %arg2[%33, %c0_20, %c0_21] : memref<3x16x128xf32, #tpu.memory_space<vmem>>, vector<1x16x128xf32>
      %35 = vector.shape_cast %34 : vector<1x16x128xf32> to vector<16x128xf32>
      %36 = arith.cmpf olt, %35, %32 : vector<16x128xf32>
      %cst_22 = arith.constant 1.000000e+00 : f32
      %cst_23 = arith.constant 0.000000e+00 : f32
      %37 = vector.broadcast %cst_22 : f32 to vector<16x128xf32>
      %38 = vector.broadcast %cst_23 : f32 to vector<16x128xf32>
      %39 = arith.select %36, %37, %38 : vector<16x128xi1>, vector<16x128xf32>
      %40 = arith.truncf %39 : vector<16x128xf32> to vector<16x128xbf16>
      %c1_i32_24 = arith.constant 1 : i32
      %41 = arith.addi %arg9, %c1_i32_24 : i32
      %cst_25 = arith.constant dense<0.000000e+00> : vector<16x128xf32>
      %42 = tpu.matmul %40, %1, %cst_25 {dimension_numbers = #tpu.dot_dimension_numbers<[1], [0], [0], [1], [0, 0, 1, 1], [], []>} : vector<16x128xbf16>, vector<128x128xbf16>, vector<16x128xf32> -> vector<16x128xf32>
      %43 = vector.broadcast %3 : vector<1x128xf32> to vector<16x128xf32>
      %44 = arith.addf %42, %43 : vector<16x128xf32>
      %45 = arith.negf %44 : vector<16x128xf32>
      %46 = math.exp %45 : vector<16x128xf32>
      %cst_26 = arith.constant 1.000000e+00 : f32
      %47 = vector.broadcast %cst_26 : f32 to vector<16x128xf32>
      %48 = arith.addf %47, %46 : vector<16x128xf32>
      %49 = arith.divf %47, %48 : vector<16x128xf32>
      %50 = arith.index_cast %41 : i32 to index
      %c0_27 = arith.constant 0 : index
      %c0_28 = arith.constant 0 : index
      %51 = vector.load %arg1[%50, %c0_27, %c0_28] : memref<4x16x128xf32, #tpu.memory_space<vmem>>, vector<1x16x128xf32>
      %52 = vector.shape_cast %51 : vector<1x16x128xf32> to vector<16x128xf32>
      %53 = arith.cmpf olt, %52, %49 : vector<16x128xf32>
      %cst_29 = arith.constant 1.000000e+00 : f32
      %cst_30 = arith.constant 0.000000e+00 : f32
      %54 = vector.broadcast %cst_29 : f32 to vector<16x128xf32>
      %55 = vector.broadcast %cst_30 : f32 to vector<16x128xf32>
      %56 = arith.select %53, %54, %55 : vector<16x128xi1>, vector<16x128xf32>
      %57 = arith.truncf %56 : vector<16x128xf32> to vector<16x128xbf16>
      scf.yield %40, %57 : vector<16x128xbf16>, vector<16x128xbf16>
    }
    %c3_i32_15 = arith.constant 3 : i32
    %23 = arith.extf %22#0 : vector<16x128xbf16> to vector<16x128xf32>
    %c0_16 = arith.constant 0 : index
    %c0_17 = arith.constant 0 : index
    %24 = vector.load %arg8[%c0_16, %c0_17] : memref<16x128xf32, #tpu.memory_space<vmem>>, vector<16x128xf32>
    tpu.vector_store %arg8[%c0_16, %c0_17], %23 {strides = array<i32>} : memref<16x128xf32, #tpu.memory_space<vmem>>, vector<16x128xf32>,
    return
  }
  func.func @transform_0(%arg0: i32) -> (i32, i32, i32) {
    %c0_i32 = arith.constant 0 : i32
    %c0_i32_0 = arith.constant 0 : i32
    %c0_i32_1 = arith.constant 0 : i32
    return %c0_i32, %arg0, %c0_i32_0 : i32, i32, i32
  }
  func.func @transform_1(%arg0: i32) -> (i32, i32, i32) {
    %c0_i32 = arith.constant 0 : i32
    %c0_i32_0 = arith.constant 0 : i32
    %c0_i32_1 = arith.constant 0 : i32
    return %c0_i32, %arg0, %c0_i32_0 : i32, i32, i32
  }
  func.func @transform_2(%arg0: i32) -> (i32, i32) {
    %c0_i32 = arith.constant 0 : i32
    %c0_i32_0 = arith.constant 0 : i32
    return %arg0, %c0_i32 : i32, i32
  }
  func.func @transform_3(%arg0: i32) -> (i32, i32) {
    %c0_i32 = arith.constant 0 : i32
    %c0_i32_0 = arith.constant 0 : i32
    %c0_i32_1 = arith.constant 0 : i32
    return %c0_i32, %c0_i32_0 : i32, i32
  }
  func.func @transform_4(%arg0: i32) -> (i32, i32) {
    %c0_i32 = arith.constant 0 : i32
    %c0_i32_0 = arith.constant 0 : i32
    %c0_i32_1 = arith.constant 0 : i32
    return %c0_i32, %c0_i32_0 : i32, i32
  }
  func.func @transform_5(%arg0: i32) -> (i32, i32) {
    %c0_i32 = arith.constant 0 : i32
    %c0_i32_0 = arith.constant 0 : i32
    %c0_i32_1 = arith.constant 0 : i32
    return %c0_i32, %c0_i32_0 : i32, i32
  }
  func.func @transform_6(%arg0: i32) -> (i32, i32) {
    %c0_i32 = arith.constant 0 : i32
    %c0_i32_0 = arith.constant 0 : i32
    %c0_i32_1 = arith.constant 0 : i32
    return %c0_i32, %c0_i32_0 : i32, i32
  }
  func.func @transform_7(%arg0: i32) -> (i32, i32) {
    %c0_i32 = arith.constant 0 : i32
    %c0_i32_0 = arith.constant 0 : i32
    return %arg0, %c0_i32 : i32, i32
  }
}

</mosaic_0001>

<bundles_post_ra>
// kernel: tpu_custom_call.1
= control target key start
LH: loop header
LB: loop body
LE: loop exit
PB: predicated region body
PF: predicated region fallthrough
CT: control target
= control target key end

     0   :  { %12 = vsyncpa [#allocation3], 0  ;;  %s1042_s0 = inlined_call_operand.hbm [shape: f32[4,16,128], index: 0, kind: input, shape index: {}]   ;;  %s1043_s1 = inlined_call_operand.hbm [shape: f32[3,16,128], index: 1, kind: input, shape index: {}]   ;;  %s1044_s2 = inlined_call_operand.hbm [shape: f32[16,128], index: 2, kind: input, shape index: {}]   ;;  %s1045_s3 = inlined_call_operand.hbm [shape: bf16[128,128], index: 3, kind: input, shape index: {}]   ;;  %s1046_s4 = inlined_call_operand.hbm [shape: bf16[128,128], index: 4, kind: input, shape index: {}]   ;;  %s1047_s5 = inlined_call_operand.vmem [shape: f32[1,128], index: 5, kind: input, shape index: {}]   ;;  %s1048_s6 = inlined_call_operand.vmem [shape: f32[1,128], index: 6, kind: input, shape index: {}]   ;;  %s1049_s7 = inlined_call_operand.hbm [shape: f32[16,128], index: 7, kind: output, shape index: {}]  }
   0x1   :  { %13 = vsyncpa [#allocation6], 0 }
   0x2   :  { %14 = vsyncpa [#allocation9], 0 }
   0x3   :  { %15 = vsyncpa [#allocation4], 0  ;;  %s33_s26 = sshll.u32 %s1043_s1, 4  ;;  %s832_s27 = smov [#allocation5]   ;;  %s34_s26 = int_to_ptr.hbm [resolvable:$true] %s33_s26 }
   0x4   :  { %s35_s28 = sshll.u32 %s832_s27, 4  ;;  %s59_s8 = sshll.u32 %s1045_s3, 4  ;;  %s36_s28 = int_to_ptr.vmem [resolvable:$true] %s35_s28  ;;  %s60_s8 = int_to_ptr.hbm [resolvable:$true] %s59_s8 }
   0x5   :  { %s833_s9 = smov 128   ;;  %s834_s10 = smov 8  }
   0x6   :  { %41 = dma.hbm_to_vmem [thread:$0]  %s34_s26, 768, %s36_s28, [#allocation6], %s833_s9, %s833_s9, %s834_s10  }
   0x7   :  { %s835_s11 = smov [#allocation8]   ;;  %s836_s13 = smov 64  }
   0x8   :  { %s61_s12 = sshll.u32 %s835_s11, 4  ;;  %s837_s1 = smov 4   ;;  %s62_s12 = int_to_ptr.vmem [resolvable:$true] %s61_s12 }
   0x9   :  { %67 = dma.hbm_to_vmem [thread:$0]  %s60_s8, 1024, %s62_s12, [#allocation9], %s836_s13, %s836_s13, %s837_s1  }
   0xa   :  { %s20_s16 = sshll.u32 %s1042_s0, 4  ;;  %s838_s17 = smov [#allocation2]   ;;  %s21_s16 = int_to_ptr.hbm [resolvable:$true] %s20_s16 }
   0xb   :  { %s22_s3 = sshll.u32 %s838_s17, 4  ;;  %s46_s20 = sshll.u32 %s1044_s2, 4  ;;  %s23_s3 = int_to_ptr.vmem [resolvable:$true] %s22_s3  ;;  %s47_s20 = int_to_ptr.hbm [resolvable:$true] %s46_s20 }
   0xc   :  { %28 = dma.hbm_to_vmem [thread:$0]  %s21_s16, 1024, %s23_s3, [#allocation3], %s833_s9, %s833_s9, %s834_s10  }
   0xd   :  { %s839_s21 = smov [#allocation7]   ;;  %s72_s25 = sshll.u32 %s1046_s4, 4  ;;  %s73_s25 = int_to_ptr.hbm [resolvable:$true] %s72_s25 }
   0xe   :  { %s48_s22 = sshll.u32 %s839_s21, 4  ;;  %s840_s0 = smov [#allocation10]   ;;  %s49_s22 = int_to_ptr.vmem [resolvable:$true] %s48_s22 }
   0xf   :  { %54 = dma.hbm_to_vmem [thread:$0]  %s47_s20, 256, %s49_s22, [#allocation6], %s833_s9, %s833_s9, %s834_s10  }
  0x10   :  { %s74_s26 = sshll.u32 %s840_s0, 4  ;;  %s75_s26 = int_to_ptr.vmem [resolvable:$true] %s74_s26 }
  0x11   :  { %80 = dma.hbm_to_vmem [thread:$0]  %s73_s25, 1024, %s75_s26, [#allocation9], %s836_s13, %s836_s13, %s837_s1  }
  0x12   :  { %812 = dma.done.wait [#allocation3], 1024  }
  0x13   :  { %813 = vsyncadd [#allocation3], 4294966272 }
  0x14   :  { %814 = dma.done.wait [#allocation6], 1024  }
  0x15   :  { %815 = vsyncadd [#allocation6], 4294966272 }
  0x16   :  { %816 = dma.done.wait [#allocation9], 2048  }
  0x17   :  { %817 = vsyncadd [#allocation9], 4294965248  ;;  %v908_v0 = vld [vmem:[#allocation8] sm:$0xf]  ;;  %v910_v1 = vld [vmem:[#allocation8] sm:$0xf0] }
  0x18   :  { %v912_v2 = vld [vmem:[#allocation8 + $0x8] sm:$0xf]  ;;  %v914_v3 = vld [vmem:[#allocation8 + $0x8] sm:$0xf0]  ;;  %v916_v4 = vld [vmem:[#allocation8 + $0x10] sm:$0xf] }
  0x19   :  { %v918_v5 = vld [vmem:[#allocation8 + $0x10] sm:$0xf0]  ;;  %v920_v6 = vld [vmem:[#allocation8 + $0x18] sm:$0xf]  ;;  %v922_v7 = vld [vmem:[#allocation8 + $0x18] sm:$0xf0] }
  0x1a   :  { %v924_v8 = vld [vmem:[#allocation8 + $0x20] sm:$0xf]  ;;  %v926_v9 = vld [vmem:[#allocation8 + $0x20] sm:$0xf0]  ;;  %v928_v10 = vld [vmem:[#allocation8 + $0x28] sm:$0xf] }
  0x1b   :  { %v930_v11 = vld [vmem:[#allocation8 + $0x28] sm:$0xf0]  ;;  %v932_v12 = vld [vmem:[#allocation8 + $0x30] sm:$0xf]  ;;  %v934_v13 = vld [vmem:[#allocation8 + $0x30] sm:$0xf0] }
  0x1c   :  { %v936_v14 = vld [vmem:[#allocation8 + $0x38] sm:$0xf]  ;;  %v938_v15 = vld [vmem:[#allocation8 + $0x38] sm:$0xf0]  ;;  %v943_v16 = vld [vmem:[%s1047_s5] sm:$0x1] }
  0x1d   :  { %v945_v17 = vld [vmem:[#allocation10 + $0x38] sm:$0xff]  ;;  %v948_v18 = vld [vmem:[#allocation10 + $0x30] sm:$0xff]  ;;  %v951_v19 = vld [vmem:[#allocation10 + $0x28] sm:$0xff]  ;;  %v841_v57 = vmov 0.0  }
  0x1e   :  { %200 = vmatpush.bf16.msra.mxu0 %v945_v17  ;;  %v954_v20 = vld [vmem:[#allocation10 + $0x20] sm:$0xff]  ;;  %v957_v21 = vld [vmem:[#allocation10 + $0x18] sm:$0xff]  ;;  %v960_v22 = vld [vmem:[#allocation10 + $0x10] sm:$0xff] }
  0x1f   :  { %v139_v23 = vld [vmem:[#allocation7] sm:$0xff]  ;;  %v140_v24 = vld [vmem:[#allocation7 + $0x8] sm:$0xff]  ;;  %v963_v27 = vld [vmem:[#allocation10 + $0x8] sm:$0xff] }
  0x20   :  { %v141_v25 = vpack.c.bf16 %v139_v23, %v139_v23  ;;  %v142_v26 = vpack.c.bf16 %v140_v24, %v140_v24  ;;  %v966_v30 = vld [vmem:[#allocation10] sm:$0xff]  ;;  %v253_v24 = vld [vmem:[#allocation2 + $0x8] sm:$0xff] }
  0x21   :  { %v972_v32 = vld [vmem:[%s1048_s6] ss:$0 sm:$0xff]  ;;  %s980_s6 = smov 0  }
  0x22   :  { %201 = vmatpush.bf16.msra.mxu0 %v948_v18  ;;  %v148_v28 = vunpack.c.l.b16 %v141_v25  ;;  %v149_v29 = vunpack.c.l.b16 %v142_v26  ;;  %v252_v52 = vld [vmem:[#allocation2] sm:$0xff] }
  0x24   :  { %v150_v31 = vpack.c.b16 %v149_v29, %v148_v28 }
  0x26   :  { %202 = vmatpush.bf16.msra.mxu0 %v951_v19 }
  0x2a   :  { %203 = vmatpush.bf16.msra.mxu0 %v954_v20 }
  0x2e   :  { %204 = vmatpush.bf16.msra.mxu0 %v957_v21 }
  0x32   :  { %205 = vmatpush.bf16.msra.mxu0 %v960_v22 }
  0x36   :  { %206 = vmatpush.bf16.msra.mxu0 %v963_v27 }
  0x3a   :  { %207 = vmatpush.bf16.msra.mxu0 %v966_v30 }
  0x3d   :  { %208 = vmatmul.bf16.vlgmr.msra.gmra.mxu0 %v150_v31 }
  0xba   :  { %v209_v33 = vpop.f32.mrf.mxu0 }
  0xbb   :  { %v210_v34 = vadd.f32 %v972_v32, %v209_v33 }
  0xbd   :  { %v537_v35 = vmul.f32 -1.442695, %v210_v34 }
  0xbf   :  { %632 = vpow2.f32 %v537_v35 }
  0xc2   :  { %v211_v36 = vpop.f32.mrf.mxu0 }
  0xc3   :  { %v212_v37 = vadd.f32 %v972_v32, %v211_v36 }
  0xc5   :  { %v633_v38 = vpop.eup %632  ;;  %v538_v39 = vmul.f32 -1.442695, %v212_v37 }
  0xc6   :  { %v220_v40 = vadd.f32 1.0, %v633_v38 }
  0xc7   :  { %634 = vpow2.f32 %v538_v39 }
  0xc8   :  { %636 = vrcp.f32 %v220_v40  ;;  %v233_v46 = vand.u32 2147483648, %v220_v40  ;;  %v231_v48 = vand.u32 2147483647, %v220_v40  ;;  %vm227_vm1 = vweird.f32 %v220_v40 }
  0xca   :  { %v234_v51 = vor.u32 1.1754944e-38, %v233_v46  ;;  %vm232_vm3 = vcmp.eq.f32.partialorder %v231_v48, 8.507059e+37 }
  0xcd   :  { %v635_v41 = vpop.eup %634 }
  0xce   :  { %v637_v42 = vpop.eup %636  ;;  %v221_v43 = vadd.f32 1.0, %v635_v41 }
  0xcf   :  { %v223_v44 = vmul.f32 %v637_v42, %v220_v40  ;;  %vm228_vm0 = vweird.f32 %v637_v42 }
  0xd0   :  { %638 = vrcp.f32 %v221_v43  ;;  %vm229_vm2 = vmor %vm227_vm1, %vm228_vm0  ;;  %v248_v59 = vand.u32 2147483648, %v221_v43  ;;  %v246_v62 = vand.u32 2147483647, %v221_v43  ;;  %vm242_vm6 = vweird.f32 %v221_v43 }
  0xd1   :  { %v224_v45 = vsub.f32 1.0, %v223_v44 }
  0xd2   :  { %v249_v23 = vor.u32 1.1754944e-38, %v248_v59  ;;  %vm247_vm8 = vcmp.eq.f32.partialorder %v246_v62, 8.507059e+37 }
  0xd3   :  { %v225_v47 = vmul.f32 %v637_v42, %v224_v45 }
  0xd5   :  { %v226_v49 = vadd.f32 %v637_v42, %v225_v47 }
  0xd6   :  { %v639_v50 = vpop.eup %638 }
  0xd7   :  { %v230_v53 = vsel %vm229_vm2, %v637_v42, %v226_v49  ;;  %v238_v54 = vmul.f32 %v639_v50, %v221_v43  ;;  %vm243_vm5 = vweird.f32 %v639_v50 }
  0xd8   :  { %v235_v55 = vsel %vm232_vm3, %v234_v51, %v230_v53  ;;  %vm244_vm7 = vmor %vm242_vm6, %vm243_vm5 }
  0xd9   :  { %vm254_vm4 = vcmp.lt.f32.partialorder %v252_v52, %v235_v55  ;;  %v239_v56 = vsub.f32 1.0, %v238_v54 }
  0xda   :  { %v256_v58 = vsel %vm254_vm4, 1.0, %v841_v57 }
  0xdb   :  { %v258_v60 = vpack.c.bf16 %v256_v58, %v256_v58   ;;  %v240_v61 = vmul.f32 %v639_v50, %v239_v56 }
  0xdd   :  { %v241_v63 = vadd.f32 %v639_v50, %v240_v61 }
  0xdf   :  { %v245_v25 = vsel %vm244_vm7, %v639_v50, %v241_v63 }
  0xe0   :  { %v250_v26 = vsel %vm247_vm8, %v249_v23, %v245_v25 }
  0xe1   :  { %vm255_vm9 = vcmp.lt.f32.partialorder %v253_v24, %v250_v26 }
  0xe2   :  { %v257_v28 = vsel %vm255_vm9, 1.0, %v841_v57 }
  0xe3   :  { %v259_v29 = vpack.c.bf16 %v257_v28, %v257_v28  }
  0xe4 LB: > { %v570_v31 = vor.u32 %v938_v15, %v936_v14  ;;  %396 = vmatpush.bf16.msra.mxu1 %v945_v17  ;;  %v566_v33 = vor.u32 %v934_v13, %v932_v12  ;;  %v562_v34 = vor.u32 %v930_v11, %v928_v10  ;;  %v558_v35 = vor.u32 %v926_v9, %v924_v8  ;;  %s573_s28 = sshll.u32 %s830_s6, 4  ;;  %s265_s6 = sadd.s32 1, %s830_s6   ;;  %s830_s6 = sphi %s980_s6, %s265_s6   ;;  %v826_v60 = vphi %v258_v60, %v456_v60   ;;  %v822_v29 = vphi %v259_v29, %v457_v29  }
  0xe5   : > { %v554_v36 = vor.u32 %v922_v7, %v920_v6  ;;  %v550_v37 = vor.u32 %v918_v5, %v916_v4  ;;  %v546_v38 = vor.u32 %v914_v3, %v912_v2  ;;  %v275_v39 = vunpack.c.l.b16 %v826_v60  ;;  %s380_s29 = scalar_lea.vmem [#allocation5], %s573_s28  ;;  %s486_s30 = scalar_lea.vmem [#allocation2], %s573_s28 }
  0xe6   : > { %327 = vmatpush.bf16.msra.mxu0 %v570_v31  ;;  %v276_v40 = vunpack.c.l.b16 %v822_v29  ;;  %v542_v41 = vor.u32 %v910_v1, %v908_v0  ;;  %v271_v43 = vperm.slane %v943_v16, 0  ;;  %v381_v25 = vld [vmem:[%s380_s29] sm:$0xff]  ;;  %p262_p0 = scmp.ge.s32.totalorder %s265_s6, 3  }
  0xe7   :  { %s468_s12 = sshll.u32 (%p262_p0), %s1049_s7, 4  ;;  %s843_s13 = smov (%p262_p0), [#allocation11]   ;;  %s469_s12 = int_to_ptr.hbm [resolvable:$true] %s468_s12 }
  0xe8   : > { %397 = vmatpush.bf16.msra.mxu1 %v948_v18  ;;  %v277_v42 = vpack.c.b16 %v276_v40, %v275_v39  ;;  %s466_s1 = sshll.u32 (%p262_p0), %s843_s13, 4  ;;  %s467_s1 = int_to_ptr.vmem [resolvable:$true] %s466_s1 }
  0xea   : > { %328 = vmatpush.bf16.msra.mxu0 %v566_v33 }
  0xec   : > { %398 = vmatpush.bf16.msra.mxu1 %v951_v19 }
  0xee   : > { %329 = vmatpush.bf16.msra.mxu0 %v562_v34 }
  0xf0   : > { %399 = vmatpush.bf16.msra.mxu1 %v954_v20 }
  0xf2   : > { %330 = vmatpush.bf16.msra.mxu0 %v558_v35  ;;  %v382_v35 = vld [vmem:[%s380_s29 + $0x8] sm:$0xff] }
  0xf4   : > { %400 = vmatpush.bf16.msra.mxu1 %v957_v21 }
  0xf6   : > { %331 = vmatpush.bf16.msra.mxu0 %v554_v36  ;;  %v842_v36 = vmov 0.0  }
  0xf8   : > { %401 = vmatpush.bf16.msra.mxu1 %v960_v22 }
  0xfa   : > { %332 = vmatpush.bf16.msra.mxu0 %v550_v37 }
  0xfc   : > { %402 = vmatpush.bf16.msra.mxu1 %v963_v27 }
  0xfe   : > { %333 = vmatpush.bf16.msra.mxu0 %v546_v38 }
 0x100   : > { %403 = vmatpush.bf16.msra.mxu1 %v966_v30 }
 0x102   : > { %334 = vmatpush.bf16.msra.mxu0 %v542_v41 }
 0x105   : > { %335 = vmatmul.bf16.vlgmr.msra.gmra.mxu0 %v277_v42 }
 0x182   : > { %v336_v44 = vpop.f32.mrf.mxu0 }
 0x183   : > { %v337_v45 = vadd.f32 %v336_v44, %v271_v43 }
 0x185   : > { %v571_v46 = vmul.f32 -1.442695, %v337_v45 }
 0x187   : > { %640 = vpow2.f32 %v571_v46 }
 0x18a   : > { %v338_v47 = vpop.f32.mrf.mxu0 }
 0x18b   : > { %v339_v48 = vadd.f32 %v338_v47, %v271_v43 }
 0x18d   : > { %v641_v49 = vpop.eup %640  ;;  %v572_v50 = vmul.f32 -1.442695, %v339_v48 }
 0x18e   : > { %v347_v51 = vadd.f32 1.0, %v641_v49 }
 0x18f   : > { %642 = vpow2.f32 %v572_v50 }
 0x190   : > { %644 = vrcp.f32 %v347_v51  ;;  %v360_v57 = vand.u32 2147483648, %v347_v51  ;;  %v358_v59 = vand.u32 2147483647, %v347_v51  ;;  %vm354_vm11 = vweird.f32 %v347_v51 }
 0x192   : > { %v361_v62 = vor.u32 1.1754944e-38, %v360_v57  ;;  %vm359_vm13 = vcmp.eq.f32.partialorder %v358_v59, 8.507059e+37 }
 0x195   : > { %v643_v52 = vpop.eup %642 }
 0x196   : > { %v645_v53 = vpop.eup %644  ;;  %v348_v54 = vadd.f32 1.0, %v643_v52 }
 0x197   : > { %v350_v55 = vmul.f32 %v645_v53, %v347_v51  ;;  %vm355_vm10 = vweird.f32 %v645_v53 }
 0x198   : > { %646 = vrcp.f32 %v348_v54  ;;  %vm356_vm12 = vmor %vm354_vm11, %vm355_vm10  ;;  %v375_v28 = vand.u32 2147483648, %v348_v54  ;;  %v373_v31 = vand.u32 2147483647, %v348_v54  ;;  %vm369_vm0 = vweird.f32 %v348_v54 }
 0x199   : > { %v351_v56 = vsub.f32 1.0, %v350_v55 }
 0x19a   : > { %v376_v34 = vor.u32 1.1754944e-38, %v375_v28  ;;  %vm374_vm2 = vcmp.eq.f32.partialorder %v373_v31, 8.507059e+37 }
 0x19b   : > { %v352_v58 = vmul.f32 %v645_v53, %v351_v56 }
 0x19d   : > { %v353_v60 = vadd.f32 %v645_v53, %v352_v58 }
 0x19e   : > { %v647_v61 = vpop.eup %646 }
 0x19f   : > { %v365_v63 = vmul.f32 %v647_v61, %v348_v54  ;;  %v357_v23 = vsel %vm356_vm12, %v645_v53, %v353_v60  ;;  %vm370_vm14 = vweird.f32 %v647_v61 }
 0x1a0   : > { %v362_v24 = vsel %vm359_vm13, %v361_v62, %v357_v23  ;;  %vm371_vm1 = vmor %vm369_vm0, %vm370_vm14  ;;  %v577_v23 = vld [vmem:[%s486_s30 + $0x10] sm:$0xff] }
 0x1a1   : > { %v366_v26 = vsub.f32 1.0, %v365_v63  ;;  %vm383_vm15 = vcmp.lt.f32.partialorder %v381_v25, %v362_v24 }
 0x1a2   : > { %v1015_v37 = vsel %vm383_vm15, 1.0, %v842_v36 }
 0x1a3   : > { %v367_v29 = vmul.f32 %v647_v61, %v366_v26  ;;  %v387_v40 = vpack.c.bf16 %v1015_v37, %v1015_v37  ;;  %460 = vst [vmem:[#allocation11] sm:$0xff] (%p262_p0), %v1015_v37 }
 0x1a5   : > { %v368_v33 = vadd.f32 %v647_v61, %v367_v29  ;;  %v392_v43 = vunpack.c.l.b16 %v387_v40 }
 0x1a7   : > { %v372_v38 = vsel %vm371_vm1, %v647_v61, %v368_v33 }
 0x1a8   : > { %v377_v39 = vsel %vm374_vm2, %v376_v34, %v372_v38 }
 0x1a9   : > { %vm384_vm3 = vcmp.lt.f32.partialorder %v382_v35, %v377_v39  ;;  %v578_v39 = vld [vmem:[%s486_s30 + $0x18] sm:$0xff] }
 0x1aa   : > { %v1019_v41 = vsel %vm384_vm3, 1.0, %v842_v36 }
 0x1ab   : > { %v388_v42 = vpack.c.bf16 %v1019_v41, %v1019_v41  ;;  %461 = vst [vmem:[#allocation11 + $0x8] sm:$0xff] (%p262_p0), %v1019_v41 }
 0x1ac   :  { %474 = dma.vmem_to_hbm [thread:$0]  (%p262_p0), %s467_s1, 256, %s469_s12, [#allocation4], %s833_s9, %s833_s9, %s834_s10  }
 0x1ad   : > { %v393_v44 = vunpack.c.l.b16 %v388_v42 }
 0x1af   : > { %v394_v45 = vpack.c.b16 %v393_v44, %v392_v43 }
 0x1b1   : > { %404 = vmatmul.bf16.vlgmr.msra.gmra.mxu1 %v394_v45 }
 0x22e   : > { %v405_v46 = vpop.f32.mrf.mxu1 }
 0x22f   : > { %v406_v47 = vadd.f32 %v972_v32, %v405_v46 }
 0x231   : > { %v574_v48 = vmul.f32 -1.442695, %v406_v47 }
 0x233   : > { %648 = vpow2.f32 %v574_v48 }
 0x236   : > { %v407_v49 = vpop.f32.mrf.mxu1 }
 0x237   : > { %v408_v50 = vadd.f32 %v972_v32, %v407_v49 }
 0x239   : > { %v649_v51 = vpop.eup %648  ;;  %v575_v52 = vmul.f32 -1.442695, %v408_v50 }
 0x23a   : > { %v416_v53 = vadd.f32 1.0, %v649_v51 }
 0x23b   : > { %650 = vpow2.f32 %v575_v52 }
 0x23c   : > { %652 = vrcp.f32 %v416_v53  ;;  %v429_v59 = vand.u32 2147483648, %v416_v53  ;;  %v427_v61 = vand.u32 2147483647, %v416_v53  ;;  %vm423_vm5 = vweird.f32 %v416_v53 }
 0x23e   : > { %v430_v24 = vor.u32 1.1754944e-38, %v429_v59  ;;  %vm428_vm7 = vcmp.eq.f32.partialorder %v427_v61, 8.507059e+37 }
 0x241   : > { %v651_v54 = vpop.eup %650 }
 0x242   : > { %v653_v55 = vpop.eup %652  ;;  %v417_v56 = vadd.f32 1.0, %v651_v54 }
 0x243   : > { %v419_v57 = vmul.f32 %v653_v55, %v416_v53  ;;  %vm424_vm4 = vweird.f32 %v653_v55 }
 0x244   : > { %654 = vrcp.f32 %v417_v56  ;;  %vm425_vm6 = vmor %vm423_vm5, %vm424_vm4  ;;  %v444_v33 = vand.u32 2147483648, %v417_v56  ;;  %v442_v35 = vand.u32 2147483647, %v417_v56  ;;  %vm438_vm10 = vweird.f32 %v417_v56 }
 0x245   : > { %v420_v58 = vsub.f32 1.0, %v419_v57 }
 0x246   : > { %v445_v40 = vor.u32 1.1754944e-38, %v444_v33  ;;  %vm443_vm12 = vcmp.eq.f32.partialorder %v442_v35, 8.507059e+37 }
 0x247   : > { %v421_v60 = vmul.f32 %v653_v55, %v420_v58 }
 0x249   : > { %v422_v62 = vadd.f32 %v653_v55, %v421_v60 }
 0x24a   : > { %v655_v63 = vpop.eup %654 }
 0x24b   : > { %v426_v25 = vsel %vm425_vm6, %v653_v55, %v422_v62  ;;  %v434_v26 = vmul.f32 %v655_v63, %v417_v56  ;;  %vm439_vm9 = vweird.f32 %v655_v63 }
 0x24c   : > { %v431_v28 = vsel %vm428_vm7, %v430_v24, %v426_v25  ;;  %vm440_vm11 = vmor %vm438_vm10, %vm439_vm9 }
 0x24d   : > { %vm452_vm8 = vcmp.lt.f32.partialorder %v577_v23, %v431_v28  ;;  %v435_v29 = vsub.f32 1.0, %v434_v26 }
 0x24e   : > { %v454_v31 = vsel %vm452_vm8, 1.0, %v842_v36 }
 0x24f   : > { %v456_v60 = vpack.c.bf16 %v454_v31, %v454_v31   ;;  %v436_v34 = vmul.f32 %v655_v63, %v435_v29 }
 0x251   : > { %v437_v38 = vadd.f32 %v655_v63, %v436_v34 }
 0x253   : > { %v441_v42 = vsel %vm440_vm11, %v655_v63, %v437_v38  ;;  %264 = sbr.rel (!%p262_p0) target bundleno = 228 (0xe4), region = 77 }
 0x254   : > { %v446_v43 = vsel %vm443_vm12, %v445_v40, %v441_v42 }
 0x255   : > { %vm453_vm13 = vcmp.lt.f32.partialorder %v578_v39, %v446_v43 }
 0x256   : > { %v455_v44 = vsel %vm453_vm13, 1.0, %v842_v36 }
 0x257   : > { %v457_v29 = vpack.c.bf16 %v455_v44, %v455_v44  }
 0x258   :  { %818 = dma.done.wait [#allocation4], 256  }
 0x259   :  { %819 = vsyncadd [#allocation4], 4294967040 }
 0x25a   :  { %479 = vsyncpa [#allocation3], 1 }
 0x25b   :  { %480 = vsyncpa [#allocation6], 1 }
 0x25c   :  { %481 = vsyncpa [#allocation9], 1 }
 0x25d   :  { %482 = vsyncpa [#allocation4], 1 }

</bundles_post_ra>
